<compile_context>
chip_gen: v7x
topology: tpu7x:2x2x1
jax: 0.10.0
libtpu: 0.0.40
codegen_flags: <defaults>
</compile_context>

<pallas_src>
import jax
import jax.numpy as jnp
from jax.experimental import pallas as pl
from jax.experimental.pallas import tpu as pltpu


def _classifier_kernel(x_ref, w1_ref, b1_ref, w2_ref, b2_ref, o_ref):
    # Two MXU matmuls + VPU leaky_relu, fully VMEM-resident.
    h = jnp.dot(x_ref[...], w1_ref[...], preferred_element_type=jnp.float32)
    h = h + b1_ref[...]                       # f32 bias add, broadcast (1, H)
    h = jnp.maximum(h, 0.01 * h)              # leaky_relu, negative_slope=0.01
    o = jnp.dot(h.astype(w2_ref.dtype), w2_ref[...],
                preferred_element_type=jnp.float32)
    o = o + b2_ref[...]                       # f32 bias add, broadcast (1, Cp)
    o_ref[...] = o.astype(o_ref.dtype)


def _round_up(n, m):
    return ((n + m - 1) // m) * m


def classifier_forward(x, w1, b1, w2, b2, *, block_batch=None,
                       compute_dtype=jnp.bfloat16, out_dtype=None):
    """x: (B, L); w1: (L, H); b1: (H,)/(1,H); w2: (H, C); b2: (C,)/(1,C).
    Returns (B, C) in out_dtype (default: x.dtype)."""
    B, L = x.shape
    H = w1.shape[1]
    C = w2.shape[1]
    out_dtype = out_dtype or x.dtype

    b1 = b1.reshape(1, H).astype(jnp.float32)
    b2 = b2.reshape(1, C).astype(jnp.float32)

    # Lane-dense output: pad class dim to a multiple of 128 so the final store
    # is a full vst (no masked partial stores); slice padding off outside.
    Cp = _round_up(C, 128)
    if Cp != C:
        w2 = jnp.pad(w2, ((0, 0), (0, Cp - C)))
        b2 = jnp.pad(b2, ((0, 0), (0, Cp - C)))

    # bf16 MXU inputs (halves HBM bytes for x / w1 / w2); accumulate in f32.
    x_c = x.astype(compute_dtype)
    w1_c = w1.astype(compute_dtype)
    w2_c = w2.astype(compute_dtype)

    # Batch tiling: weights stay VMEM-resident across grid steps (constant
    # index_map) while x / out tiles are double-buffered by the pipeline.
    if block_batch is None:
        block_batch = min(_round_up(B, 8), 512)
    TB = block_batch
    Bp = _round_up(B, TB)
    if Bp != B:
        x_c = jnp.pad(x_c, ((0, Bp - B), (0, 0)))
    grid = (Bp // TB,)

    flops = 2 * Bp * (L * H + H * Cp)
    bytes_accessed = (x_c.size * x_c.dtype.itemsize
                      + w1_c.size * w1_c.dtype.itemsize
                      + w2_c.size * w2_c.dtype.itemsize
                      + b1.size * 4 + b2.size * 4
                      + Bp * Cp * jnp.dtype(out_dtype).itemsize)
    cost = pl.CostEstimate(flops=flops, transcendentals=0,
                           bytes_accessed=bytes_accessed)

    out = pl.pallas_call(
        _classifier_kernel,
        out_shape=jax.ShapeDtypeStruct((Bp, Cp), out_dtype),
        grid=grid,
        in_specs=[
            pl.BlockSpec((TB, L), lambda i: (i, 0)),   # x tile, pipelined
            pl.BlockSpec((L, H), lambda i: (0, 0)),    # w1 resident
            pl.BlockSpec((1, H), lambda i: (0, 0)),    # b1 resident
            pl.BlockSpec((H, Cp), lambda i: (0, 0)),   # w2 resident (padded)
            pl.BlockSpec((1, Cp), lambda i: (0, 0)),   # b2 resident (padded)
        ],
        out_specs=pl.BlockSpec((TB, Cp), lambda i: (i, 0)),
        compiler_params=pltpu.CompilerParams(
            dimension_semantics=("parallel",),        # shard batch over TCs
            vmem_limit_bytes=64 * 1024 * 1024,
        ),
        cost_estimate=cost,
    )(x_c, w1_c, b1, w2_c, b2)

    return out[:B, :C]


def _ref_forward_f32(x, w1, b1, w2, b2):
    h = x @ w1 + b1.reshape(1, -1)
    h = jnp.where(h > 0, h, 0.01 * h)
    return h @ w2 + b2.reshape(1, -1)


def _ref_forward_matched(x, w1, b1, w2, b2):
    # Same precision recipe as the kernel: bf16 MXU inputs, f32 accumulation.
    xb, w1b, w2b = (a.astype(jnp.bfloat16) for a in (x, w1, w2))
    h = jnp.dot(xb, w1b, preferred_element_type=jnp.float32) + b1.reshape(1, -1)
    h = jnp.maximum(h, 0.01 * h)
    o = jnp.dot(h.astype(jnp.bfloat16), w2b,
                preferred_element_type=jnp.float32) + b2.reshape(1, -1)
    return o.astype(x.dtype)


if __name__ == "__main__":
    # Small shapes consistent with the module.
    batch = 8
    latent_size = 32
    hidden_size = 64
    n_classes = 10

    key = jax.random.PRNGKey(0)
    kx, kw1, kb1, kw2, kb2 = jax.random.split(key, 5)

    x = jax.random.normal(kx, (batch, latent_size), dtype=jnp.float32)

    # Deterministic parameter init (PyTorch-like uniform bounds), stored (in, out).
    bound1 = 1.0 / (latent_size ** 0.5)
    w1 = jax.random.uniform(kw1, (latent_size, hidden_size), jnp.float32,
                            -bound1, bound1)
    b1 = jax.random.uniform(kb1, (hidden_size,), jnp.float32, -bound1, bound1)

    bound2 = 1.0 / (hidden_size ** 0.5)
    w2 = jax.random.uniform(kw2, (hidden_size, n_classes), jnp.float32,
                            -bound2, bound2)
    b2 = jax.random.uniform(kb2, (n_classes,), jnp.float32, -bound2, bound2)

    out = classifier_forward(x, w1, b1, w2, b2)
    out = jax.block_until_ready(out)
    assert out.shape == (batch, n_classes)

    # Precision-matched reference (bf16 inputs / f32 accumulation): tight check.
    ref_m = _ref_forward_matched(x, w1, b1, w2, b2)
    assert jnp.allclose(out, ref_m, atol=1e-3, rtol=1e-3), \
        float(jnp.max(jnp.abs(out - ref_m)))

    # Full f32 reference (PyTorch semantics): loose check for bf16 MXU inputs.
    ref_f32 = _ref_forward_f32(x, w1, b1, w2, b2)
    assert jnp.allclose(out, ref_f32, atol=5e-2, rtol=5e-2), \
        float(jnp.max(jnp.abs(out - ref_f32)))

    print("KERNEL_OK")
</pallas_src>

<mosaic_0001>
module attributes {stable_mosaic.version = 11 : i64} {
  func.func @_classifier_kernel(%arg0: i32, %arg1: memref<8x32xbf16, #tpu.memory_space<vmem>>, %arg2: memref<32x64xbf16, #tpu.memory_space<vmem>>, %arg3: memref<1x64xf32, #tpu.memory_space<vmem>>, %arg4: memref<64x128xbf16, #tpu.memory_space<vmem>>, %arg5: memref<1x128xf32, #tpu.memory_space<vmem>>, %arg6: memref<8x128xf32, #tpu.memory_space<vmem>>) attributes {dimension_semantics = [#tpu.dimension_semantics<parallel>], iteration_bounds = array<i64: 1>, scalar_prefetch = 0 : i64, scratch_operands = 0 : i64, tpu.core_type = #tpu.core_type<tc>, window_params = [{transform_indices = @transform_0, window_bounds = array<i64: 8, 32>}, {pipeline_mode = #tpu.pipeline_mode<synchronous>, transform_indices = @transform_1, window_bounds = array<i64: 32, 64>}, {pipeline_mode = #tpu.pipeline_mode<synchronous>, transform_indices = @transform_2, window_bounds = array<i64: 1, 64>}, {pipeline_mode = #tpu.pipeline_mode<synchronous>, transform_indices = @transform_3, window_bounds = array<i64: 64, 128>}, {pipeline_mode = #tpu.pipeline_mode<synchronous>, transform_indices = @transform_4, window_bounds = array<i64: 1, 128>}, {transform_indices = @transform_5, window_bounds = array<i64: 8, 128>}]} {
    %c0 = arith.constant 0 : index
    %c0_0 = arith.constant 0 : index
    %0 = vector.load %arg1[%c0, %c0_0] : memref<8x32xbf16, #tpu.memory_space<vmem>>, vector<8x32xbf16>
    %c0_1 = arith.constant 0 : index
    %c0_2 = arith.constant 0 : index
    %1 = vector.load %arg2[%c0_1, %c0_2] : memref<32x64xbf16, #tpu.memory_space<vmem>>, vector<32x64xbf16>
    %cst = arith.constant dense<0.000000e+00> : vector<8x64xf32>
    %2 = tpu.matmul %0, %1, %cst {dimension_numbers = #tpu.dot_dimension_numbers<[1], [0], [0], [1], [0, 0, 1, 1], [], []>} : vector<8x32xbf16>, vector<32x64xbf16>, vector<8x64xf32> -> vector<8x64xf32>
    %c0_3 = arith.constant 0 : index
    %c0_4 = arith.constant 0 : index
    %3 = vector.load %arg3[%c0_3, %c0_4] : memref<1x64xf32, #tpu.memory_space<vmem>>, vector<1x64xf32>
    %4 = vector.broadcast %3 : vector<1x64xf32> to vector<8x64xf32>
    %5 = arith.addf %2, %4 : vector<8x64xf32>
    %cst_5 = arith.constant 0.00999999977 : f32
    %6 = vector.broadcast %cst_5 : f32 to vector<8x64xf32>
    %7 = arith.mulf %6, %5 : vector<8x64xf32>
    %8 = arith.maximumf %5, %7 : vector<8x64xf32>
    %9 = arith.truncf %8 : vector<8x64xf32> to vector<8x64xbf16>
    %c0_6 = arith.constant 0 : index
    %c0_7 = arith.constant 0 : index
    %10 = vector.load %arg4[%c0_6, %c0_7] : memref<64x128xbf16, #tpu.memory_space<vmem>>, vector<64x128xbf16>
    %cst_8 = arith.constant dense<0.000000e+00> : vector<8x128xf32>
    %11 = tpu.matmul %9, %10, %cst_8 {dimension_numbers = #tpu.dot_dimension_numbers<[1], [0], [0], [1], [0, 0, 1, 1], [], []>} : vector<8x64xbf16>, vector<64x128xbf16>, vector<8x128xf32> -> vector<8x128xf32>
    %c0_9 = arith.constant 0 : index
    %c0_10 = arith.constant 0 : index
    %12 = vector.load %arg5[%c0_9, %c0_10] : memref<1x128xf32, #tpu.memory_space<vmem>>, vector<1x128xf32>
    %13 = vector.broadcast %12 : vector<1x128xf32> to vector<8x128xf32>
    %14 = arith.addf %11, %13 : vector<8x128xf32>
    %c0_11 = arith.constant 0 : index
    %c0_12 = arith.constant 0 : index
    %15 = vector.load %arg6[%c0_11, %c0_12] : memref<8x128xf32, #tpu.memory_space<vmem>>, vector<8x128xf32>
    tpu.vector_store %arg6[%c0_11, %c0_12], %14 {strides = array<i32>} : memref<8x128xf32, #tpu.memory_space<vmem>>, vector<8x128xf32>,
    return
  }
  func.func @transform_0(%arg0: i32) -> (i32, i32) {
    %c0_i32 = arith.constant 0 : i32
    %c0_i32_0 = arith.constant 0 : i32
    return %arg0, %c0_i32 : i32, i32
  }
  func.func @transform_1(%arg0: i32) -> (i32, i32) {
    %c0_i32 = arith.constant 0 : i32
    %c0_i32_0 = arith.constant 0 : i32
    %c0_i32_1 = arith.constant 0 : i32
    return %c0_i32, %c0_i32_0 : i32, i32
  }
  func.func @transform_2(%arg0: i32) -> (i32, i32) {
    %c0_i32 = arith.constant 0 : i32
    %c0_i32_0 = arith.constant 0 : i32
    %c0_i32_1 = arith.constant 0 : i32
    return %c0_i32, %c0_i32_0 : i32, i32
  }
  func.func @transform_3(%arg0: i32) -> (i32, i32) {
    %c0_i32 = arith.constant 0 : i32
    %c0_i32_0 = arith.constant 0 : i32
    %c0_i32_1 = arith.constant 0 : i32
    return %c0_i32, %c0_i32_0 : i32, i32
  }
  func.func @transform_4(%arg0: i32) -> (i32, i32) {
    %c0_i32 = arith.constant 0 : i32
    %c0_i32_0 = arith.constant 0 : i32
    %c0_i32_1 = arith.constant 0 : i32
    return %c0_i32, %c0_i32_0 : i32, i32
  }
  func.func @transform_5(%arg0: i32) -> (i32, i32) {
    %c0_i32 = arith.constant 0 : i32
    %c0_i32_0 = arith.constant 0 : i32
    return %arg0, %c0_i32 : i32, i32
  }
}

</mosaic_0001>

<bundles_post_ra>
// kernel: tpu_custom_call.1
= control target key start
LH: loop header
LB: loop body
LE: loop exit
PB: predicated region body
PF: predicated region fallthrough
CT: control target
= control target key end

     0   :  { %10 = vsyncpa [#allocation3], 0  ;;  %s562_s0 = inlined_call_operand.hbm [shape: bf16[8,32], index: 0, kind: input, shape index: {}]   ;;  %s563_s1 = inlined_call_operand.hbm [shape: bf16[32,64], index: 1, kind: input, shape index: {}]   ;;  %s564_s2 = inlined_call_operand.hbm [shape: f32[1,64], index: 2, kind: input, shape index: {}]   ;;  %s565_s3 = inlined_call_operand.hbm [shape: bf16[64,128], index: 3, kind: input, shape index: {}]   ;;  %s566_s4 = inlined_call_operand.hbm [shape: f32[1,128], index: 4, kind: input, shape index: {}]   ;;  %s567_s5 = inlined_call_operand.hbm [shape: f32[8,128], index: 5, kind: output, shape index: {}]  }
   0x1   :  { %11 = vsyncpa [#allocation6], 0 }
   0x2   :  { %12 = vsyncpa [#allocation9], 0 }
   0x3   :  { %13 = vsyncpa [#allocation4], 0  ;;  %s450_s18 = smov [#allocation5]   ;;  %s310_s22 = scalar_lea.hbm %s563_s1, 256 }
   0x4   :  { %s29_s19 = sshll.u32 %s450_s18, 4  ;;  %p311_p0 = scmp.ne.s32.totalorder %s563_s1, %s310_s22  ;;  %s30_s19 = int_to_ptr.vmem [resolvable:$true] %s29_s19 }
   0x5   :  { %p314_p1 = scmp.lt.u32.totalorder %s310_s22, %s563_s1 }
   0x7   :  { %p316_p2 = pnand %p314_p1, %p311_p0 }
   0x9   :  { %319 = shalt.err (!%p316_p2)
}
   0xa   :  { %s320_s27 = scalar_lea.vmem %s30_s19, 256  ;;  %p325_p4 = scmp.lt.s32.totalorder %s30_s19, %s30_s19 }
   0xb   :  { %p321_p3 = scmp.ne.s32.totalorder %s30_s19, %s320_s27  ;;  %p326_p5 = scmp.lt.s32.totalorder %s320_s27, %s320_s27 }
   0xd   :  { %p327_p6 = por %p326_p5, %p325_p4 }
   0xf   :  { %p328_p7 = pnand %p327_p6, %p321_p3 }
  0x11   :  { %331 = shalt.err (!%p328_p7)
}
  0x12   :  { %s451_s28 = smov 64   ;;  %s452_s29 = smov 4  }
  0x13   :  { %35 = dma.hbm_to_vmem [thread:$0]  %s563_s1, 256, %s30_s19, [#allocation6], %s451_s28, %s451_s28, %s452_s29  }
  0x14   :  { %s453_s7 = smov [#allocation8]   ;;  %s454_s9 = smov [#allocation2]  }
  0x15   :  { %s51_s8 = sshll.u32 %s453_s7, 4  ;;  %s20_s10 = sshll.u32 %s454_s9, 4  ;;  %s52_s8 = int_to_ptr.vmem [resolvable:$true] %s51_s8  ;;  %s21_s10 = int_to_ptr.vmem [resolvable:$true] %s20_s10 }
  0x16   :  { %s332_s13 = scalar_lea.hbm %s565_s3, 512 }
  0x17   :  { %p333_p8 = scmp.ne.s32.totalorder %s565_s3, %s332_s13  ;;  %p336_p9 = scmp.lt.u32.totalorder %s332_s13, %s565_s3 }
  0x19   :  { %p338_p10 = pnand %p336_p9, %p333_p8 }
  0x1b   :  { %341 = shalt.err (!%p338_p10)
}
  0x1c   :  { %s342_s1 = scalar_lea.vmem %s52_s8, 512  ;;  %p347_p12 = scmp.lt.s32.totalorder %s52_s8, %s52_s8 }
  0x1d   :  { %p343_p11 = scmp.ne.s32.totalorder %s52_s8, %s342_s1  ;;  %p348_p13 = scmp.lt.s32.totalorder %s342_s1, %s342_s1 }
  0x1f   :  { %p349_p0 = por %p348_p13, %p347_p12 }
  0x21   :  { %p350_p1 = pnand %p349_p0, %p343_p11 }
  0x23   :  { %353 = shalt.err (!%p350_p1)
}
  0x24   :  { %57 = dma.hbm_to_vmem [thread:$0]  %s565_s3, 512, %s52_s8, [#allocation9], %s451_s28, %s451_s28, %s452_s29  }
  0x25   :  { %s354_s22 = scalar_lea.hbm %s562_s0, 64 }
  0x26   :  { %p355_p2 = scmp.ne.s32.totalorder %s562_s0, %s354_s22  ;;  %p358_p3 = scmp.lt.u32.totalorder %s354_s22, %s562_s0 }
  0x28   :  { %p360_p4 = pnand %p358_p3, %p355_p2 }
  0x2a   :  { %363 = shalt.err (!%p360_p4)
}
  0x2b   :  { %s364_s27 = scalar_lea.vmem %s21_s10, 64  ;;  %p369_p6 = scmp.lt.s32.totalorder %s21_s10, %s21_s10 }
  0x2c   :  { %p365_p5 = scmp.ne.s32.totalorder %s21_s10, %s364_s27  ;;  %p370_p7 = scmp.lt.s32.totalorder %s364_s27, %s364_s27 }
  0x2e   :  { %p371_p8 = por %p370_p7, %p369_p6 }
  0x30   :  { %p372_p9 = pnand %p371_p8, %p365_p5 }
  0x32   :  { %375 = shalt.err (!%p372_p9)
}
  0x33   :  { %23 = dma.hbm_to_vmem [thread:$0]  %s562_s0, 64, %s21_s10, [#allocation3]  }
  0x34   :  { %s455_s29 = smov [#allocation7]   ;;  %s456_s6 = smov [#allocation10]  }
  0x35   :  { %s42_s30 = sshll.u32 %s455_s29, 4  ;;  %s64_s7 = sshll.u32 %s456_s6, 4  ;;  %s43_s30 = int_to_ptr.vmem [resolvable:$true] %s42_s30  ;;  %s65_s7 = int_to_ptr.vmem [resolvable:$true] %s64_s7 }
  0x36   :  { %s376_s11 = scalar_lea.hbm %s564_s2, 16 }
  0x37   :  { %p377_p10 = scmp.ne.s32.totalorder %s564_s2, %s376_s11  ;;  %p380_p11 = scmp.lt.u32.totalorder %s376_s11, %s564_s2 }
  0x39   :  { %p382_p12 = pnand %p380_p11, %p377_p10 }
  0x3b   :  { %385 = shalt.err (!%p382_p12)
}
  0x3c   :  { %s386_s0 = scalar_lea.vmem %s43_s30, 16  ;;  %s390_s10 = scalar_lea.vmem %s43_s30, 32 }
  0x3d   :  { %p387_p13 = scmp.ne.s32.totalorder %s43_s30, %s386_s0  ;;  %p391_p0 = scmp.lt.s32.totalorder %s43_s30, %s43_s30 }
  0x3e   :  { %p392_p1 = scmp.lt.s32.totalorder %s390_s10, %s386_s0 }
  0x40   :  { %p393_p2 = por %p392_p1, %p391_p0 }
  0x42   :  { %p394_p3 = pnand %p393_p2, %p387_p13 }
  0x44   :  { %397 = shalt.err (!%p394_p3)
}
  0x45   :  { %45 = dma.hbm_to_vmem [thread:$0]  %s564_s2, 16, %s43_s30, [#allocation6]  }
  0x46   :  { %s398_s19 = scalar_lea.hbm %s566_s4, 16 }
  0x47   :  { %p399_p4 = scmp.ne.s32.totalorder %s566_s4, %s398_s19  ;;  %p402_p5 = scmp.lt.u32.totalorder %s398_s19, %s566_s4 }
  0x49   :  { %p404_p6 = pnand %p402_p5, %p399_p4 }
  0x4b   :  { %407 = shalt.err (!%p404_p6)
}
  0x4c   :  { %s408_s24 = scalar_lea.vmem %s65_s7, 16  ;;  %s412_s25 = scalar_lea.vmem %s65_s7, 32 }
  0x4d   :  { %p409_p7 = scmp.ne.s32.totalorder %s65_s7, %s408_s24  ;;  %p413_p8 = scmp.lt.s32.totalorder %s65_s7, %s65_s7 }
  0x4e   :  { %p414_p9 = scmp.lt.s32.totalorder %s412_s25, %s408_s24 }
  0x50   :  { %p415_p10 = por %p414_p9, %p413_p8 }
  0x52   :  { %p416_p11 = pnand %p415_p10, %p409_p7 }
  0x54   :  { %419 = shalt.err (!%p416_p11)
}
  0x55   :  { %67 = dma.hbm_to_vmem [thread:$0]  %s566_s4, 16, %s65_s7, [#allocation9]  }
  0x56   :  { %442 = dma.done.wait [#allocation3], 64  }
  0x57   :  { %443 = vsyncadd [#allocation3], 4294967232 }
  0x58   :  { %444 = dma.done.wait [#allocation6], 272  }
  0x59   :  { %445 = vsyncadd [#allocation6], 4294967024 }
  0x5a   :  { %446 = dma.done.wait [#allocation9], 528  }
  0x5b   :  { %447 = vsyncadd [#allocation9], 4294966768  ;;  %v457_v0 = vmov 0.0   ;;  %vm458_vm0 = vmmov 0   ;;  %v304_v1 = vld [vmem:[#allocation5] sm:$0xff]   ;;  %v305_v2 = vld [vmem:[#allocation5 + $0x8] sm:$0xff]  }
  0x5c   :  { %274 = vmatprep.subr.bf16.mxu0 %v457_v0  ;;  %278 = vmatprep.mubr.msk.bf16.mxu0 %vm458_vm0, %v457_v0  ;;  %v306_v3 = vld [vmem:[#allocation8] sm:$0xff]   ;;  %v307_v4 = vld [vmem:[#allocation8 + $0x8] sm:$0xff]   ;;  %vm108_vm1 = vcmask 261120   ;;  %v308_v6 = vld [vmem:[#allocation8 + $0x10] sm:$0xff]   ;;  %vm194_vm2 = vcmask 523264   ;;  %s459_s4 = smov [#allocation11]  }
  0x5d   :  { %282 = vmatprep.subr.bf16.mxu1 %v457_v0  ;;  %290 = vmatprep.mubr.msk.bf16.mxu1 %vm458_vm0, %v457_v0  ;;  %v84_v5 = vld [vmem:[#allocation2] sm:$0xf]  ;;  %v309_v7 = vld [vmem:[#allocation8 + $0x18] sm:$0xff]   ;;  %v260_v17 = vld [vmem:[#allocation10] ss:$0 sm:$0xff]  ;;  %s245_s27 = sshll.u32 %s459_s4, 4  ;;  %s246_s27 = int_to_ptr.vmem [resolvable:$true] %s245_s27 }
  0x5e   :  { %275 = vmatpush3.bf16.msra.mxu0 %v304_v1  ;;  %283 = vmatpush3.bf16.msra.mxu1 %v306_v3  ;;  %v256_v8 = vld [vmem:[#allocation7] ss:$0 sm:$0xff]  ;;  %s420_s3 = scalar_lea.vmem %s246_s27, 128  ;;  %p425_p13 = scmp.lt.s32.totalorder %s246_s27, %s246_s27 }
  0x5f   :  { %276 = vmatprep.subr.bf16.mxu0 %v457_v0  ;;  %284 = vmatprep.subr.bf16.mxu1 %v457_v0  ;;  %p421_p12 = scmp.ne.s32.totalorder %s246_s27, %s420_s3  ;;  %p426_p0 = scmp.lt.s32.totalorder %s420_s3, %s420_s3 }
  0x61   :  { %p427_p1 = por %p426_p0, %p425_p13 }
  0x62   :  { %277 = vmatpush3.bf16.msra.mxu0 %v305_v2  ;;  %285 = vmatpush3.bf16.msra.mxu1 %v307_v4 }
  0x63   :  { %286 = vmatprep.subr.bf16.mxu1 %v457_v0  ;;  %p428_p2 = pnand %p427_p1, %p421_p12 }
  0x65   :  { %279 = vmatmul.mubr.msk.bf16.vlgmr.msra.gmra.mrb[0].mxu0 %vm108_vm1, %v84_v5 }
  0x66   :  { %287 = vmatpush3.bf16.msra.mxu1 %v308_v6 }
  0x67   :  { %288 = vmatprep.subr.bf16.mxu1 %v457_v0 }
  0x6a   :  { %289 = vmatpush3.bf16.msra.mxu1 %v309_v7 }
 0x138   :  { %v146_v9 = vpop.f32.mrb[0].mxu0 }
 0x139   :  { %v147_v10 = vadd.f32 %v256_v8, %v146_v9  ;;  %v280_v11 = vpop.f32.mrb[1].mxu0 }
 0x13a   :  { %v149_v12 = vpop.f32.mrb[2].mxu0 }
 0x13b   :  { %v152_v13 = vmul.f32 0.01, %v147_v10  ;;  %v281_v14 = vpop.f32.mrb[3].mxu0 }
 0x13d   :  { %v153_v15 = vmax.f32 %v147_v10, %v152_v13 }
 0x13f   :  { %v154_v16 = vpack.c.bf16 %v153_v15, %v153_v15 }
 0x141   :  { %291 = vmatmul.mubr.msk.bf16.vlgmr.msra.gmra.mrb[0].mxu1 %vm194_vm2, %v154_v16 }
 0x214   :  { %v232_v18 = vpop.f32.mrb[0].mxu1 }
 0x215   :  { %v233_v19 = vadd.f32 %v260_v17, %v232_v18  ;;  %v292_v20 = vpop.f32.mrb[1].mxu1 }
 0x216   :  { %v235_v21 = vpop.f32.mrb[2].mxu1 }
 0x217   :  { %238 = vst [vmem:[#allocation11] sm:$0xff] %v233_v19  ;;  %v293_v22 = vpop.f32.mrb[3].mxu1 }
 0x218   :  { %431 = shalt.err (!%p428_p2)
}
 0x219   :  { %s432_s30 = scalar_lea.hbm %s567_s5, 128 }
 0x21a   :  { %p433_p3 = scmp.ne.s32.totalorder %s567_s5, %s432_s30  ;;  %p436_p4 = scmp.lt.u32.totalorder %s432_s30, %s567_s5 }
 0x21c   :  { %p438_p5 = pnand %p436_p4, %p433_p3 }
 0x21e   :  { %441 = shalt.err (!%p438_p5)
}
 0x21f   :  { %248 = dma.vmem_to_hbm [thread:$0]  %s246_s27, 128, %s567_s5, [#allocation4]  }
 0x220   :  { %448 = dma.done.wait [#allocation4], 128  }
 0x221   :  { %449 = vsyncadd [#allocation4], 4294967168 }
 0x222   :  { %252 = vsyncpa [#allocation3], 1 }
 0x223   :  { %253 = vsyncpa [#allocation6], 1 }
 0x224   :  { %254 = vsyncpa [#allocation9], 1 }
 0x225   :  { %255 = vsyncpa [#allocation4], 1 }

</bundles_post_ra>
